<compile_context>
chip_gen: v6e
topology: v6e:2x2x1
jax: 0.10.0
libtpu: 0.0.40
codegen_flags: <defaults>
</compile_context>

<pallas_src>
import functools

import jax
import jax.numpy as jnp
import numpy as np
from jax.experimental import pallas as pl
from jax.experimental.pallas import tpu as pltpu


LANE = 128


def _round_up(x, m):
    return ((x + m - 1) // m) * m


def attention_kernel(enc_ref, dec_ref, we_ref, be_ref, wd_ref, bd_ref,
                     wf_ref, bf_ref, awe_ref, alpha_ref, *, num_pixels):
    # Per grid step (one batch element):
    #   enc_ref: (1, Pp, Ep) f32   dec_ref: (1, 1, Dp) f32
    #   we_ref:  (Ep, Ap) bf16     wd_ref:  (Dp, Ap) bf16
    #   be_ref / bd_ref / wf_ref: (1, Ap) f32
    #   bf_ref:  (1, 1) f32 scalar in SMEM
    #   awe_ref: (1, 1, Ep) f32    alpha_ref: (1, 1, Pp) f32
    enc = enc_ref[0]                      # (Pp, Ep) f32 — read once, reused below
    dec = dec_ref[0]                      # (1, Dp)  f32

    # encoder / decoder projections: bf16 MXU matmuls, f32 accumulation.
    att1 = jnp.dot(enc.astype(jnp.bfloat16), we_ref[...],
                   preferred_element_type=jnp.float32) + be_ref[...]      # (Pp, Ap)
    att2 = jnp.dot(dec.astype(jnp.bfloat16), wd_ref[...],
                   preferred_element_type=jnp.float32) + bd_ref[...]      # (1, Ap)

    h = jnp.maximum(att1 + att2, 0.0)                                     # (Pp, Ap)

    # full_att projection (attention_dim -> 1): VPU multiply + XLU lane reduce.
    score = jnp.sum(h[None, :, :] * wf_ref[...][None, :, :], axis=-1)     # (1, Pp)
    score = score + bf_ref[0, 0]

    # Mask padded pixels, then softmax over the lane-dense pixel axis.
    pix = jax.lax.broadcasted_iota(jnp.int32, score.shape, 1)
    score = jnp.where(pix < num_pixels, score, -1e30)
    m = jnp.max(score, axis=-1, keepdims=True)                            # (1, 1)
    e = jnp.exp(score - m)                                                # (1, Pp)
    denom = jnp.sum(e, axis=-1, keepdims=True)                            # (1, 1)
    alpha = e * pl.reciprocal(denom, approx=True)                         # (1, Pp)
    alpha_ref[0] = alpha

    # attention_weighted_encoding in f32, reusing the already-resident enc block.
    awe_ref[0] = jnp.sum(enc[None, :, :] * alpha[:, :, None], axis=1)     # (1, Ep)


def attention_forward(encoder_out, decoder_hidden, params):
    B, P, E = encoder_out.shape
    D = decoder_hidden.shape[1]
    A = params["W_enc"].shape[1]

    Pp = _round_up(P, LANE)
    Ep = _round_up(E, LANE)
    Dp = _round_up(D, LANE)
    Ap = _round_up(A, LANE)

    # Wrapper-side zero padding / reshaping: exact (zeros contribute nothing),
    # keeps all in-kernel tiles lane/sublane aligned and output stores lane-dense.
    enc = jnp.pad(encoder_out.astype(jnp.float32),
                  ((0, 0), (0, Pp - P), (0, Ep - E)))                     # (B, Pp, Ep)
    dec = jnp.pad(decoder_hidden.astype(jnp.float32),
                  ((0, 0), (0, Dp - D))).reshape(B, 1, Dp)                # (B, 1, Dp)
    we = jnp.pad(params["W_enc"], ((0, Ep - E), (0, Ap - A))).astype(jnp.bfloat16)
    wd = jnp.pad(params["W_dec"], ((0, Dp - D), (0, Ap - A))).astype(jnp.bfloat16)
    be = jnp.pad(params["b_enc"], ((0, 0), (0, Ap - A))).astype(jnp.float32)
    bd = jnp.pad(params["b_dec"], ((0, 0), (0, Ap - A))).astype(jnp.float32)
    wf = jnp.pad(params["w_full"], ((0, 0), (0, Ap - A))).astype(jnp.float32)
    bf = params["b_full"].astype(jnp.float32).reshape(1, 1)

    kernel = functools.partial(attention_kernel, num_pixels=P)

    cost = pl.CostEstimate(
        flops=int(B * (2 * Pp * Ep * Ap + 2 * Dp * Ap + 4 * Pp * Ap + 2 * Pp * Ep + 4 * Pp)),
        transcendentals=int(B * Pp),
        bytes_accessed=int(enc.size * 4 + dec.size * 4 + we.size * 2 + wd.size * 2
                           + (be.size + bd.size + wf.size + 1) * 4
                           + B * Ep * 4 + B * Pp * 4),
    )

    awe_p, alpha_p = pl.pallas_call(
        kernel,
        grid=(B,),
        in_specs=[
            pl.BlockSpec((1, Pp, Ep), lambda b: (b, 0, 0)),                  # encoder_out (read once/step)
            pl.BlockSpec((1, 1, Dp), lambda b: (b, 0, 0)),                   # decoder_hidden
            pl.BlockSpec((Ep, Ap), lambda b: (0, 0)),                        # W_enc (stays resident)
            pl.BlockSpec((1, Ap), lambda b: (0, 0)),                         # b_enc
            pl.BlockSpec((Dp, Ap), lambda b: (0, 0)),                        # W_dec
            pl.BlockSpec((1, Ap), lambda b: (0, 0)),                         # b_dec
            pl.BlockSpec((1, Ap), lambda b: (0, 0)),                         # w_full
            pl.BlockSpec(memory_space=pltpu.MemorySpace.SMEM),               # b_full scalar
        ],
        out_specs=(
            pl.BlockSpec((1, 1, Ep), lambda b: (b, 0, 0)),                   # attention_weighted_encoding
            pl.BlockSpec((1, 1, Pp), lambda b: (b, 0, 0)),                   # alpha (lane-dense)
        ),
        out_shape=(
            jax.ShapeDtypeStruct((B, 1, Ep), jnp.float32),
            jax.ShapeDtypeStruct((B, 1, Pp), jnp.float32),
        ),
        compiler_params=pltpu.CompilerParams(
            dimension_semantics=("parallel",),
            vmem_limit_bytes=32 * 1024 * 1024,
        ),
        cost_estimate=cost,
    )(enc, dec, we, be, wd, bd, wf, bf)

    # Strip the padding added in the wrapper.
    return awe_p[:, 0, :E], alpha_p[:, 0, :P]


def reference_forward(enc, dec, p, *, mixed):
    """Pure-JAX reference. mixed=True applies the same bf16 casts to the MXU
    operands that the kernel uses; mixed=False is the exact f32 module math."""
    if mixed:
        we, wd = p["W_enc"].astype(jnp.bfloat16), p["W_dec"].astype(jnp.bfloat16)
        enc_mm, dec_mm = enc.astype(jnp.bfloat16), dec.astype(jnp.bfloat16)
    else:
        we, wd, enc_mm, dec_mm = p["W_enc"], p["W_dec"], enc, dec
    att1 = jnp.einsum("bpe,ea->bpa", enc_mm, we,
                      preferred_element_type=jnp.float32) + p["b_enc"][0]
    att2 = jnp.dot(dec_mm, wd, preferred_element_type=jnp.float32) + p["b_dec"][0]
    h = jnp.maximum(att1 + att2[:, None, :], 0.0)
    score = jnp.sum(h * p["w_full"][0][None, None, :], axis=-1) + p["b_full"][0, 0]
    alpha = jax.nn.softmax(score, axis=1)
    awe = jnp.sum(enc * alpha[:, :, None], axis=1)
    return awe, alpha


if __name__ == "__main__":
    B, P = 2, 16                      # batch, num_pixels
    ENC_DIM, DEC_DIM, ATT_DIM = 32, 32, 32

    key = jax.random.PRNGKey(0)
    keys = jax.random.split(key, 8)

    encoder_out = jax.random.normal(keys[0], (B, P, ENC_DIM), jnp.float32)
    decoder_hidden = jax.random.normal(keys[1], (B, DEC_DIM), jnp.float32)

    # Deterministic synthetic params ((in, out) layout = nn.Linear.weight.T)
    params = {
        "W_enc": 0.1 * jax.random.normal(keys[2], (ENC_DIM, ATT_DIM), jnp.float32),
        "b_enc": 0.1 * jax.random.normal(keys[3], (1, ATT_DIM), jnp.float32),
        "W_dec": 0.1 * jax.random.normal(keys[4], (DEC_DIM, ATT_DIM), jnp.float32),
        "b_dec": 0.1 * jax.random.normal(keys[5], (1, ATT_DIM), jnp.float32),
        "w_full": 0.1 * jax.random.normal(keys[6], (1, ATT_DIM), jnp.float32),
        "b_full": 0.1 * jax.random.normal(keys[7], (1, 1), jnp.float32),
    }

    awe, alpha = attention_forward(encoder_out, decoder_hidden, params)
    awe = jax.block_until_ready(awe)
    alpha = jax.block_until_ready(alpha)
    assert awe.shape == (B, ENC_DIM) and alpha.shape == (B, P)

    # Strict check vs. a reference with the same bf16 MXU casts (kernel semantics).
    awe_mx, alpha_mx = reference_forward(encoder_out, decoder_hidden, params, mixed=True)
    np.testing.assert_allclose(np.asarray(alpha), np.asarray(alpha_mx), rtol=2e-3, atol=2e-3)
    np.testing.assert_allclose(np.asarray(awe), np.asarray(awe_mx), rtol=2e-3, atol=2e-3)

    # Loose sanity check vs. the pure-f32 PyTorch-module math.
    awe_f32, alpha_f32 = reference_forward(encoder_out, decoder_hidden, params, mixed=False)
    np.testing.assert_allclose(np.asarray(alpha), np.asarray(alpha_f32), rtol=5e-2, atol=5e-2)
    np.testing.assert_allclose(np.asarray(awe), np.asarray(awe_f32), rtol=5e-2, atol=5e-2)

    print("KERNEL_OK")
</pallas_src>

<mosaic_0001>
module attributes {stable_mosaic.version = 11 : i64} {
  func.func @attention_kernel(%arg0: i32, %arg1: memref<1x128x128xf32, #tpu.memory_space<vmem>>, %arg2: memref<1x1x128xf32, #tpu.memory_space<vmem>>, %arg3: memref<128x128xbf16, #tpu.memory_space<vmem>>, %arg4: memref<1x128xf32, #tpu.memory_space<vmem>>, %arg5: memref<128x128xbf16, #tpu.memory_space<vmem>>, %arg6: memref<1x128xf32, #tpu.memory_space<vmem>>, %arg7: memref<1x128xf32, #tpu.memory_space<vmem>>, %arg8: memref<1x1xf32, #tpu.memory_space<smem>>, %arg9: memref<1x1x128xf32, #tpu.memory_space<vmem>>, %arg10: memref<1x1x128xf32, #tpu.memory_space<vmem>>) attributes {dimension_semantics = [#tpu.dimension_semantics<parallel>], iteration_bounds = array<i64: 2>, scalar_prefetch = 0 : i64, scratch_operands = 0 : i64, tpu.core_type = #tpu.core_type<tc>, window_params = [{transform_indices = @transform_0, window_bounds = array<i64: 1, 128, 128>}, {transform_indices = @transform_1, window_bounds = array<i64: 1, 1, 128>}, {pipeline_mode = #tpu.pipeline_mode<synchronous>, transform_indices = @transform_2, window_bounds = array<i64: 128, 128>}, {pipeline_mode = #tpu.pipeline_mode<synchronous>, transform_indices = @transform_3, window_bounds = array<i64: 1, 128>}, {pipeline_mode = #tpu.pipeline_mode<synchronous>, transform_indices = @transform_4, window_bounds = array<i64: 128, 128>}, {pipeline_mode = #tpu.pipeline_mode<synchronous>, transform_indices = @transform_5, window_bounds = array<i64: 1, 128>}, {pipeline_mode = #tpu.pipeline_mode<synchronous>, transform_indices = @transform_6, window_bounds = array<i64: 1, 128>}, {transform_indices = @transform_7, window_bounds = array<i64: 1, 1>}, {transform_indices = @transform_8, window_bounds = array<i64: 1, 1, 128>}, {transform_indices = @transform_9, window_bounds = array<i64: 1, 1, 128>}]} {
    %c0 = arith.constant 0 : index
    %c0_0 = arith.constant 0 : index
    %c0_1 = arith.constant 0 : index
    %0 = vector.load %arg1[%c0, %c0_0, %c0_1] : memref<1x128x128xf32, #tpu.memory_space<vmem>>, vector<1x128x128xf32>
    %1 = vector.shape_cast %0 : vector<1x128x128xf32> to vector<128x128xf32>
    %c0_2 = arith.constant 0 : index
    %c0_3 = arith.constant 0 : index
    %c0_4 = arith.constant 0 : index
    %2 = vector.load %arg2[%c0_2, %c0_3, %c0_4] : memref<1x1x128xf32, #tpu.memory_space<vmem>>, vector<1x1x128xf32>
    %3 = vector.shape_cast %2 : vector<1x1x128xf32> to vector<1x128xf32>
    %4 = arith.truncf %1 : vector<128x128xf32> to vector<128x128xbf16>
    %c0_5 = arith.constant 0 : index
    %c0_6 = arith.constant 0 : index
    %5 = vector.load %arg3[%c0_5, %c0_6] : memref<128x128xbf16, #tpu.memory_space<vmem>>, vector<128x128xbf16>
    %cst = arith.constant dense<0.000000e+00> : vector<128x128xf32>
    %6 = tpu.matmul %4, %5, %cst {dimension_numbers = #tpu.dot_dimension_numbers<[1], [0], [0], [1], [0, 0, 1, 1], [], []>} : vector<128x128xbf16>, vector<128x128xbf16>, vector<128x128xf32> -> vector<128x128xf32>
    %c0_7 = arith.constant 0 : index
    %c0_8 = arith.constant 0 : index
    %7 = vector.load %arg4[%c0_7, %c0_8] : memref<1x128xf32, #tpu.memory_space<vmem>>, vector<1x128xf32>
    %8 = vector.broadcast %7 : vector<1x128xf32> to vector<128x128xf32>
    %9 = arith.addf %6, %8 : vector<128x128xf32>
    %10 = arith.truncf %3 : vector<1x128xf32> to vector<1x128xbf16>
    %c0_9 = arith.constant 0 : index
    %c0_10 = arith.constant 0 : index
    %11 = vector.load %arg5[%c0_9, %c0_10] : memref<128x128xbf16, #tpu.memory_space<vmem>>, vector<128x128xbf16>
    %cst_11 = arith.constant dense<0.000000e+00> : vector<1x128xf32>
    %12 = tpu.matmul %10, %11, %cst_11 {dimension_numbers = #tpu.dot_dimension_numbers<[1], [0], [0], [1], [0, 0, 1, 1], [], []>} : vector<1x128xbf16>, vector<128x128xbf16>, vector<1x128xf32> -> vector<1x128xf32>
    %c0_12 = arith.constant 0 : index
    %c0_13 = arith.constant 0 : index
    %13 = vector.load %arg6[%c0_12, %c0_13] : memref<1x128xf32, #tpu.memory_space<vmem>>, vector<1x128xf32>
    %14 = arith.addf %12, %13 : vector<1x128xf32>
    %15 = vector.broadcast %14 : vector<1x128xf32> to vector<128x128xf32>
    %16 = arith.addf %9, %15 : vector<128x128xf32>
    %cst_14 = arith.constant 0.000000e+00 : f32
    %17 = vector.broadcast %cst_14 : f32 to vector<128x128xf32>
    %18 = arith.maximumf %16, %17 : vector<128x128xf32>
    %19 = vector.shape_cast %18 : vector<128x128xf32> to vector<1x128x128xf32>
    %c0_15 = arith.constant 0 : index
    %c0_16 = arith.constant 0 : index
    %20 = vector.load %arg7[%c0_15, %c0_16] : memref<1x128xf32, #tpu.memory_space<vmem>>, vector<1x128xf32>
    %21 = vector.shape_cast %20 : vector<1x128xf32> to vector<1x1x128xf32>
    %22 = vector.broadcast %21 : vector<1x1x128xf32> to vector<1x128x128xf32>
    %23 = arith.mulf %19, %22 : vector<1x128x128xf32>
    %cst_17 = arith.constant dense<0.000000e+00> : vector<1x128xf32>
    %24 = vector.multi_reduction <add>, %23, %cst_17 [2] : vector<1x128x128xf32> to vector<1x128xf32>
    %c0_18 = arith.constant 0 : index
    %c0_19 = arith.constant 0 : index
    %25 = memref.load %arg8[%c0_18, %c0_19] : memref<1x1xf32, #tpu.memory_space<smem>>
    %26 = vector.broadcast %25 : f32 to vector<1x128xf32>
    %27 = arith.addf %24, %26 : vector<1x128xf32>
    %28 = tpu.iota {dimensions = array<i32: 1>} : vector<1x128xi32>
    %c16_i32 = arith.constant 16 : i32
    %29 = vector.broadcast %c16_i32 : i32 to vector<1x128xi32>
    %30 = arith.cmpi slt, %28, %29 : vector<1x128xi32>
    %cst_20 = arith.constant -1.000000e+30 : f32
    %31 = vector.broadcast %cst_20 : f32 to vector<1x128xf32>
    %32 = arith.select %30, %27, %31 : vector<1x128xi1>, vector<1x128xf32>
    %cst_21 = arith.constant dense<0xFF800000> : vector<1xf32>
    %33 = vector.multi_reduction <maximumf>, %32, %cst_21 [1] : vector<1x128xf32> to vector<1xf32>
    %34 = vector.shape_cast %33 : vector<1xf32> to vector<1x1xf32>
    %35 = vector.broadcast %34 : vector<1x1xf32> to vector<1x128xf32>
    %36 = arith.subf %32, %35 : vector<1x128xf32>
    %37 = math.exp %36 : vector<1x128xf32>
    %cst_22 = arith.constant dense<0.000000e+00> : vector<1xf32>
    %38 = vector.multi_reduction <add>, %37, %cst_22 [1] : vector<1x128xf32> to vector<1xf32>
    %39 = vector.shape_cast %38 : vector<1xf32> to vector<1x1xf32>
    %40 = tpu.reciprocal %39 {approx = true} : vector<1x1xf32> -> vector<1x1xf32>
    %41 = vector.broadcast %40 : vector<1x1xf32> to vector<1x128xf32>
    %42 = arith.mulf %37, %41 : vector<1x128xf32>
    %c0_23 = arith.constant 0 : index
    %c0_24 = arith.constant 0 : index
    %c0_25 = arith.constant 0 : index
    %43 = vector.load %arg10[%c0_23, %c0_24, %c0_25] : memref<1x1x128xf32, #tpu.memory_space<vmem>>, vector<1x1x128xf32>
    %44 = vector.shape_cast %43 : vector<1x1x128xf32> to vector<1x128xf32>
    %45 = vector.shape_cast %42 : vector<1x128xf32> to vector<1x1x128xf32>
    tpu.vector_store %arg10[%c0_23, %c0_24, %c0_25], %45 {strides = array<i32>} : memref<1x1x128xf32, #tpu.memory_space<vmem>>, vector<1x1x128xf32>,
    %46 = vector.shape_cast %1 : vector<128x128xf32> to vector<1x128x128xf32>
    %47 = vector.shape_cast %42 : vector<1x128xf32> to vector<1x128x1xf32>
    %48 = vector.broadcast %47 : vector<1x128x1xf32> to vector<1x128x128xf32>
    %49 = arith.mulf %46, %48 : vector<1x128x128xf32>
    %cst_26 = arith.constant dense<0.000000e+00> : vector<1x128xf32>
    %50 = vector.multi_reduction <add>, %49, %cst_26 [1] : vector<1x128x128xf32> to vector<1x128xf32>
    %c0_27 = arith.constant 0 : index
    %c0_28 = arith.constant 0 : index
    %c0_29 = arith.constant 0 : index
    %51 = vector.load %arg9[%c0_27, %c0_28, %c0_29] : memref<1x1x128xf32, #tpu.memory_space<vmem>>, vector<1x1x128xf32>
    %52 = vector.shape_cast %51 : vector<1x1x128xf32> to vector<1x128xf32>
    %53 = vector.shape_cast %50 : vector<1x128xf32> to vector<1x1x128xf32>
    tpu.vector_store %arg9[%c0_27, %c0_28, %c0_29], %53 {strides = array<i32>} : memref<1x1x128xf32, #tpu.memory_space<vmem>>, vector<1x1x128xf32>,
    return
  }
  func.func @transform_0(%arg0: i32) -> (i32, i32, i32) {
    %c0_i32 = arith.constant 0 : i32
    %c0_i32_0 = arith.constant 0 : i32
    %c0_i32_1 = arith.constant 0 : i32
    return %arg0, %c0_i32, %c0_i32_0 : i32, i32, i32
  }
  func.func @transform_1(%arg0: i32) -> (i32, i32, i32) {
    %c0_i32 = arith.constant 0 : i32
    %c0_i32_0 = arith.constant 0 : i32
    %c0_i32_1 = arith.constant 0 : i32
    return %arg0, %c0_i32, %c0_i32_0 : i32, i32, i32
  }
  func.func @transform_2(%arg0: i32) -> (i32, i32) {
    %c0_i32 = arith.constant 0 : i32
    %c0_i32_0 = arith.constant 0 : i32
    %c0_i32_1 = arith.constant 0 : i32
    return %c0_i32, %c0_i32_0 : i32, i32
  }
  func.func @transform_3(%arg0: i32) -> (i32, i32) {
    %c0_i32 = arith.constant 0 : i32
    %c0_i32_0 = arith.constant 0 : i32
    %c0_i32_1 = arith.constant 0 : i32
    return %c0_i32, %c0_i32_0 : i32, i32
  }
  func.func @transform_4(%arg0: i32) -> (i32, i32) {
    %c0_i32 = arith.constant 0 : i32
    %c0_i32_0 = arith.constant 0 : i32
    %c0_i32_1 = arith.constant 0 : i32
    return %c0_i32, %c0_i32_0 : i32, i32
  }
  func.func @transform_5(%arg0: i32) -> (i32, i32) {
    %c0_i32 = arith.constant 0 : i32
    %c0_i32_0 = arith.constant 0 : i32
    %c0_i32_1 = arith.constant 0 : i32
    return %c0_i32, %c0_i32_0 : i32, i32
  }
  func.func @transform_6(%arg0: i32) -> (i32, i32) {
    %c0_i32 = arith.constant 0 : i32
    %c0_i32_0 = arith.constant 0 : i32
    %c0_i32_1 = arith.constant 0 : i32
    return %c0_i32, %c0_i32_0 : i32, i32
  }
  func.func @transform_7(%arg0: i32) -> (i32, i32) {
    %c0_i32 = arith.constant 0 : i32
    %c0_i32_0 = arith.constant 0 : i32
    %c0_i32_1 = arith.constant 0 : i32
    return %c0_i32, %c0_i32_0 : i32, i32
  }
  func.func @transform_8(%arg0: i32) -> (i32, i32, i32) {
    %c0_i32 = arith.constant 0 : i32
    %c0_i32_0 = arith.constant 0 : i32
    %c0_i32_1 = arith.constant 0 : i32
    return %arg0, %c0_i32, %c0_i32_0 : i32, i32, i32
  }
  func.func @transform_9(%arg0: i32) -> (i32, i32, i32) {
    %c0_i32 = arith.constant 0 : i32
    %c0_i32_0 = arith.constant 0 : i32
    %c0_i32_1 = arith.constant 0 : i32
    return %arg0, %c0_i32, %c0_i32_0 : i32, i32, i32
  }
}

</mosaic_0001>

<bundles_post_ra>
// kernel: tpu_custom_call.1
= control target key start
LH: loop header
LB: loop body
LE: loop exit
PB: predicated region body
PF: predicated region fallthrough
CT: control target
= control target key end

     0   :  { %s2077_s0 = inlined_call_operand.hbm [shape: f32[2,128,128], index: 0, kind: input, shape index: {}]   ;;  %s2078_s1 = inlined_call_operand.vmem [shape: f32[2,1,128], index: 1, kind: input, shape index: {}]   ;;  %s2079_s2 = inlined_call_operand.hbm [shape: bf16[128,128], index: 2, kind: input, shape index: {}]   ;;  %s2080_s3 = inlined_call_operand.vmem [shape: f32[1,128], index: 3, kind: input, shape index: {}]   ;;  %s2081_s4 = inlined_call_operand.hbm [shape: bf16[128,128], index: 4, kind: input, shape index: {}]   ;;  %s2082_s5 = inlined_call_operand.vmem [shape: f32[1,128], index: 5, kind: input, shape index: {}]   ;;  %s2083_s6 = inlined_call_operand.vmem [shape: f32[1,128], index: 6, kind: input, shape index: {}]   ;;  %s2084_s7 = inlined_call_operand.<no memory space> [shape: f32[1,1], index: 7, kind: input, shape index: {}]   ;;  %s2085_s8 = inlined_call_operand.hbm [shape: f32[2,1,128], index: 8, kind: output, shape index: {0}]   ;;  %s2086_s9 = inlined_call_operand.hbm [shape: f32[2,1,128], index: 9, kind: output, shape index: {1}]  }
   0x1   :  { %2091 = sst [smem:[#allocation16_spill]] %s2079_s2 }
   0x2   :  { %2092 = sst [smem:[#allocation17_spill]] %s2081_s4 }
   0x3   :  { %15 = sst [smem:[#allocation2]] %s2084_s7 }
   0x4   :  { %16 = vsyncpa [#allocation4], 0 }
   0x5   :  { %18 = vsyncpa [#allocation4 + $0x1], 0 }
   0x6   :  { %19 = vsyncpa [#allocation7], 0 }
   0x7   :  { %20 = vsyncpa [#allocation5], 0 }
   0x8   :  { %22 = vsyncpa [#allocation5 + $0x1], 0 }
   0x9   :  { %23 = vsyncpa [#allocation11], 0 }
   0xa   :  { %25 = vsyncpa [#allocation11 + $0x1], 0  ;;  %s1667_s11 = smov 0   ;;  %s1669_s12 = smov 0  }
   0xb   :  { %s1671_s13 = smov 0   ;;  %s1673_s14 = smov 0  }
   0xc LB: > { %s1688_s7 = sadd.s32 4294967295, %s1601_s14   ;;  %s1213_s15 = sadd.s32 4294967294, %s1601_s14   ;;  %s1601_s14 = sphi %s1673_s14, %s2112_s14   ;;  %s1597_s13 = sphi %s1671_s13, %s2111_s13   ;;  %s1593_s12 = sphi %s1669_s12, %s2110_s12   ;;  %s1589_s11 = sphi %s1667_s11, %s2109_s11  }
   0xd   : > { %p51_p0 = scmp.ne.s32.totalorder %s1593_s12, %s1589_s11  ;;  %p2087_p1 = scmp.eq.s32.totalorder %s1688_s7, 0 }
   0xe   : > { %p233_p3 = scmp.eq.s32.totalorder %s1213_s15, 1  ;;  %p1214_p5 = scmp.ge.s32.totalorder %s1601_s14, 1 }
   0xf   : > { %p1697_p4 = por %p2087_p1, %p51_p0  ;;  %p266_p7 = scmp.lt.s32.totalorder %s1601_s14, 3 }
  0x10   : > { %p1702_p6 = por %p233_p3, %p51_p0  ;;  %s1603_s19 = smov [#allocation6]  }
  0x11   : > { %s2093_s16 = scalar_select %p1697_p4, 1, 0 }
  0x12   : > { %s2094_s17 = scalar_select %p1702_p6, 1, 0 }
  0x13   : > { %p1707_p8 = pnand %p1214_p5, %p266_p7  ;;  %s278_s20 = sshll.u32 %s1603_s19, 4  ;;  %s279_s20 = int_to_ptr.vmem [resolvable:$true] %s278_s20 }
  0x14   : > { %s1604_s22 = smov [#allocation8]   ;;  %s1434_s24 = scalar_lea.vmem %s279_s20, 1024 }
  0x15   : > { %s2095_s18 = scalar_select %p1707_p8, 1, 0 }
  0x16   : > { %p1339_p9 = pneg %p1707_p8  ;;  %s294_s23 = sshll.u32 %s1604_s22, 4  ;;  %s295_s23 = int_to_ptr.vmem [resolvable:$true] %s294_s23 }
  0x17   : > { %p1435_p13 = scmp.ne.s32.totalorder %s279_s20, %s1434_s24  ;;  %p1442_p5 = scmp.lt.s32.totalorder %s279_s20, %s279_s20 }
  0x18   : > { %p1716_p11 = pnand %p1339_p9, %p2087_p1  ;;  %p1443_p7 = scmp.lt.s32.totalorder %s1434_s24, %s1434_s24 }
  0x1a   : > { %p1425_p12 = pneg %p1716_p11  ;;  %p1444_p10 = por %p1443_p7, %p1442_p5 }
  0x1c   : > { %p1437_p0 = pnand %p1435_p13, %p1425_p12 }
  0x1e   : > { %p1438_p3 = pneg %p1437_p0 }
  0x20   : > { %p1445_p9 = pnand %p1444_p10, %p1438_p3 }
  0x22   : > { %1448 = shalt.err (!%p1445_p9)
}
  0x23   : > { %s1605_s25 = smov 64   ;;  %s1606_s26 = smov 4  }
  0x24   : > { %s2097_s2 = sld [smem:[#allocation16_spill]]  ;;  %s1460_s29 = scalar_lea.vmem %s295_s23, 1024 }
  0x25   : > { %p1461_p1 = scmp.ne.s32.totalorder %s295_s23, %s1460_s29  ;;  %p1468_p2 = scmp.lt.s32.totalorder %s295_s23, %s295_s23 }
  0x26   : > { %p1469_p6 = scmp.lt.s32.totalorder %s1460_s29, %s1460_s29 }
  0x27   : > { %p1463_p13 = pnand %p1461_p1, %p1425_p12 }
  0x28   : > { %p1470_p5 = por %p1469_p6, %p1468_p2 }
  0x29   : > { %p1464_p0 = pneg %p1463_p13 }
  0x2a   : > { %1342 = dma.hbm_to_vmem [thread:$0]  (!%p1716_p11), %s2097_s2, 1024, %s279_s20, [#allocation7], %s1605_s25, %s1605_s25, %s1606_s26  }
  0x2b   : > { %p1471_p10 = pnand %p1470_p5, %p1464_p0 }
  0x2d   : > { %1474 = shalt.err (!%p1471_p10)
}
  0x2e   : > { %s2098_s4 = sld [smem:[#allocation17_spill]]  ;;  %s1739_s15 = sadd.s32 1, %s1601_s14  }
  0x2f   : > { %s38_s19 = sadd.s32 1, %s1597_s13  ;;  %s35_s20 = ssub.s32 %s1601_s14, %s1739_s15 }
  0x30   : > { %p45_p1 = scmp.ne.s32.totalorder %s1597_s13, %s1593_s12  ;;  %p36_p2 = scmp.eq.s32.totalorder %s35_s20, 0 }
  0x31   : > { %p46_p6 = scmp.eq.s32.totalorder %s1601_s14, 0  ;;  %p2099_p12 = scmp.eq.s32.totalorder %s1688_s7, 1 }
  0x32   : > { %p1359_p7 = scmp.lt.s32.totalorder %s1601_s14, 2  ;;  %s317_s24 = sand.u32 1, %s1597_s13  }
  0x33   : > { %p1749_p3 = por %p2099_p12, %p45_p1  ;;  %p47_p9 = por %p46_p6, %p45_p1 }
  0x34   : > { %1345 = dma.hbm_to_vmem [thread:$0]  (!%p1716_p11), %s2098_s4, 1024, %s295_s23, [#allocation7], %s1605_s25, %s1605_s25, %s1606_s26  }
  0x35   : > { %s2100_s21 = scalar_select %p1749_p3, 1, 0 }
  0x36   : > { %s1755_s22 = scalar_select %p36_p2, %s1597_s13, %s38_s19  }
  0x37   : > { %s1218_s27 = sshll.u32 %s317_s24, 7  ;;  %s1247_s23 = sshll.u32 %s1601_s14, 11 }
  0x38   : > { %s1762_s28 = scalar_lea.hbm %s2077_s0, %s1247_s23  ;;  %s321_s29 = scalar_lea.vmem [#allocation3], %s1218_s27 }
  0x39   : > { %s328_s30 = sshll.u32 %s321_s29, 4  ;;  %p1766_p11 = pnand %p1359_p7, %p47_p9  ;;  %s1764_s30 = int_to_ptr.vmem [resolvable:$true] %s328_s30 }
  0x3a   : > { %s1770_s19 = scalar_lea.sflag [#allocation4], %s317_s24  ;;  %s1475_s20 = scalar_lea.hbm %s1762_s28, 2048 }
  0x3b   : > { %p1476_p13 = scmp.ne.s32.totalorder %s1762_s28, %s1475_s20  ;;  %p1477_p0 = pneg %p1766_p11 }
  0x3c   : > { %s1480_s27 = scalar_lea.hbm %s2077_s0, 4096  ;;  %p1481_p1 = scmp.lt.s32.totalorder %s1762_s28, %s2077_s0 }
  0x3d   : > { %p1478_p5 = pnand %p1477_p0, %p1476_p13  ;;  %p1482_p2 = scmp.lt.s32.totalorder %s1480_s27, %s1475_s20 }
  0x3f   : > { %p1479_p10 = pneg %p1478_p5  ;;  %p1483_p6 = por %p1482_p2, %p1481_p1 }
  0x41   : > { %p1484_p12 = pnand %p1483_p6, %p1479_p10 }
  0x43   : > { %1487 = shalt.err (!%p1484_p12)
}
  0x44   : > { %s1488_s24 = scalar_lea.vmem %s1764_s30, 2048  ;;  %s1607_s2 = smov [#allocation3]  }
  0x45   : > { %p1489_p7 = scmp.ne.s32.totalorder %s1764_s30, %s1488_s24  ;;  %s1493_s4 = sshll.u32 %s1607_s2, 4  ;;  %s1494_s4 = int_to_ptr.vmem [resolvable:$false] %s1493_s4 }
  0x46   : > { %s1495_s23 = scalar_lea.vmem %s1494_s4, 4096  ;;  %p1496_p5 = scmp.lt.s32.totalorder %s1764_s30, %s1494_s4 }
  0x47   : > { %p1491_p9 = pnand %p1489_p7, %p1477_p0  ;;  %p1497_p3 = scmp.lt.s32.totalorder %s1495_s23, %s1488_s24 }
  0x49   : > { %p1492_p13 = pneg %p1491_p9  ;;  %p1498_p4 = por %p1497_p3, %p1496_p5 }
  0x4b   : > { %p1499_p8 = pnand %p1498_p4, %p1492_p13 }
  0x4d   : > { %1502 = shalt.err (!%p1499_p8)
}
  0x4e   : > { %s1608_s20 = smov 128   ;;  %s1609_s25 = smov 8  }
  0x4f   : > { %1349 = dma.hbm_to_vmem [thread:$0]  (!%p1766_p11), %s1762_s28, 2048, %s1764_s30, %s1770_s19, %s1608_s20, %s1608_s20, %s1609_s25  }
  0x50   : > { %p2102_p0 = scmp.ne.s32.totalorder %s2095_s18, 0 }
  0x51   : > { %s1794_s2 = sand.u32 (!%p2102_p0), 1, %s1593_s12   ;;  %p2103_p4 = scmp.ne.s32.totalorder (!%p2102_p0), %s2093_s16, 0 }
  0x52   : > { %346 = sbr.rel (%p2102_p0) target bundleno = 994 (0x3e2), region = 52  ;;  %s1222_s4 = sshll.u32 (!%p2102_p0), %s1794_s2, 7 }
  0x53   : > { %s349_s27 = scalar_lea.sflag (!%p2102_p0), [#allocation4], %s1794_s2  ;;  %s1798_s26 = scalar_lea.vmem (!%p2102_p0), [#allocation3], %s1222_s4 }
  0x57   : > { %1572 = dma.done.wait (%p2103_p4), %s349_s27, 2048  }
  0x58   : > { %1574 = vsyncadd (%p2103_p4), %s349_s27, 4294965248  ;;  %p2104_p8 = scmp.eq.s32.totalorder %s1688_s7, 0 }
  0x5a   : > { %1576 = dma.done.wait (%p2104_p8), [#allocation7], 2048   ;;  %p2105_p3 = pmov %p2104_p8 }
  0x5b   : > { %v1610_v0 = vmov 0.0   ;;  %vm1611_vm0 = vmmov 0   ;;  %v1403_v1 = vld [vmem:[#allocation6 + $0x38] sm:$0xff]   ;;  %v1405_v3 = vld [vmem:[#allocation6 + $0x30] sm:$0xff]   ;;  %v1407_v5 = vld [vmem:[#allocation6 + $0x28] sm:$0xff]   ;;  %p401_p11 = scmp.lt.s32.totalorder %s1688_s7, 1  ;;  %v704_v43 = vlaneseq }
  0x5c   : > { %1578 = vsyncadd (%p2105_p3), [#allocation7], 4294965248  ;;  %1305 = vmatprep.subr.bf16.mxu1 %v1610_v0  ;;  %1321 = vmatprep.mubr.msk.bf16.mxu1 %vm1611_vm0, %v1610_v0  ;;  %v1404_v2 = vld [vmem:[#allocation8 + $0x38] sm:$0xff]   ;;  %v1406_v4 = vld [vmem:[#allocation8 + $0x30] sm:$0xff]   ;;  %s795_s25 = sld [smem:[#allocation2]]  ;;  %vm841_vm1 = vcmask 130112  }
  0x5d   : > { %1273 = vmatprep.subr.bf16.mxu0 %v1403_v1  ;;  %1306 = vmatpush3.bf16.msra.mxu1 %v1404_v2  ;;  %v1408_v6 = vld [vmem:[#allocation8 + $0x28] sm:$0xff]   ;;  %v1409_v7 = vld [vmem:[#allocation6 + $0x20] sm:$0xff]   ;;  %v1411_v9 = vld [vmem:[#allocation6 + $0x18] sm:$0xff]   ;;  %s402_s16 = scalar_select %p401_p11, %s1688_s7, 1  ;;  %v1878_v44 = vshrl.u32 %v704_v43, 7  ;;  %vm848_vm2 = vcmask 195712  }
  0x5e   : > { %1274 = vmatpush3.bf16.msra.mxu0 %v1403_v1  ;;  %1307 = vmatprep.subr.bf16.mxu1 %v1610_v0  ;;  %v1410_v8 = vld [vmem:[#allocation8 + $0x20] sm:$0xff]   ;;  %v1412_v10 = vld [vmem:[#allocation8 + $0x18] sm:$0xff]   ;;  %v1413_v11 = vld [vmem:[#allocation6 + $0x10] sm:$0xff]   ;;  %vm855_vm3 = vcmask 261312   ;;  %vm862_vm4 = vcmask 326912   ;;  %vm869_vm5 = vcmask 392512  }
  0x5f   : > { %1275 = vmatprep.subr.bf16.mxu0 %v1405_v3  ;;  %v1809_v12 = vld [vmem:[%s1798_s26] sm:$0xff]  ;;  %v1812_v13 = vld [vmem:[%s1798_s26 + $0x8] sm:$0xff]  ;;  %v1414_v15 = vld [vmem:[#allocation8 + $0x10] sm:$0xff]   ;;  %s403_s30 = scalar_lea.vmem %s2078_s1, %s402_s16  ;;  %v706_v47 = vsub.s32 0, %v1878_v44  ;;  %vm876_vm6 = vcmask 458112   ;;  %vm883_vm7 = vcmask 523712  }
  0x60   : > { %v422_v14 = vpack.c.bf16 %v1812_v13, %v1809_v12  ;;  %v1415_v16 = vld [vmem:[#allocation6 + $0x8] sm:$0xff]   ;;  %v1417_v18 = vld [vmem:[#allocation6] sm:$0xff]   ;;  %v1822_v21 = vld [vmem:[%s1798_s26 + $0x10] sm:$0xff]  ;;  %vm890_vm8 = vcmask 589312   ;;  %vm897_vm9 = vcmask 654912   ;;  %vm904_vm10 = vcmask 720512  }
  0x61   : > { %1308 = vmatpush3.bf16.msra.mxu1 %v1406_v4  ;;  %v1416_v17 = vld [vmem:[#allocation8 + $0x8] sm:$0xff]   ;;  %v1418_v19 = vld [vmem:[#allocation8] sm:$0xff]   ;;  %v1825_v22 = vld [vmem:[%s1798_s26 + $0x18] sm:$0xff]  ;;  %vm911_vm11 = vcmask 786112   ;;  %vm918_vm12 = vcmask 851712   ;;  %vm925_vm13 = vcmask 917312  }
  0x62   : > { %1276 = vmatpush3.bf16.msra.mxu0 %v1405_v3  ;;  %1309 = vmatprep.subr.bf16.mxu1 %v1610_v0  ;;  %v421_v20 = vld [vmem:[%s403_s30] sm:$0x1]  ;;  %v1831_v24 = vld [vmem:[%s1798_s26 + $0x28] sm:$0xff]  ;;  %v423_v26 = vpack.c.bf16 %v1825_v22, %v1822_v21  ;;  %v1838_v28 = vld [vmem:[%s1798_s26 + $0x30] sm:$0xff]  ;;  %vm932_vm14 = vcmask 982912   ;;  %vm939_vm15 = vcmask 1048512  }
  0x63   : > { %1277 = vmatprep.subr.bf16.mxu0 %v1407_v5  ;;  %1289 = vmatprep.mubr.bf16.mxu0 %v422_v14  ;;  %v1828_v23 = vld [vmem:[%s1798_s26 + $0x20] sm:$0xff]  ;;  %v598_v25 = vpack.c.bf16 %v421_v20, %v421_v20  ;;  %v1841_v29 = vld [vmem:[%s1798_s26 + $0x38] sm:$0xff]  ;;  %v1847_v31 = vld [vmem:[%s1798_s26 + $0x48] sm:$0xff]  ;;  %s400_s4 = scalar_lea.vmem [#allocation10], %s1794_s2  ;;  %s1243_s27 = sshll.u32 %s1688_s7, 4 }
  0x64   : > { %v424_v27 = vpack.c.bf16 %v1831_v24, %v1828_v23  ;;  %v1844_v30 = vld [vmem:[%s1798_s26 + $0x40] sm:$0xff]  ;;  %v425_v32 = vpack.c.bf16 %v1841_v29, %v1838_v28  ;;  %v1854_v34 = vld [vmem:[%s1798_s26 + $0x50] sm:$0xff]  ;;  %v1857_v35 = vld [vmem:[%s1798_s26 + $0x58] sm:$0xff]  ;;  %s1089_s18 = scalar_lea.hbm %s2086_s9, %s1243_s27  ;;  %s1091_s28 = sshll.u32 %s400_s4, 4  ;;  %s1092_s28 = int_to_ptr.vmem [resolvable:$true] %s1091_s28 }
  0x65   : > { %1310 = vmatpush3.bf16.msra.mxu1 %v1408_v6  ;;  %v426_v33 = vpack.c.bf16 %v1847_v31, %v1844_v30  ;;  %v1860_v36 = vld [vmem:[%s1798_s26 + $0x60] sm:$0xff]  ;;  %v1863_v37 = vld [vmem:[%s1798_s26 + $0x68] sm:$0xff]  ;;  %v427_v38 = vpack.c.bf16 %v1857_v35, %v1854_v34  ;;  %v1870_v40 = vld [vmem:[%s1798_s26 + $0x70] sm:$0xff]  ;;  %s1066_s30 = scalar_lea.sflag [#allocation11], %s1794_s2  ;;  %s1503_s10 = scalar_lea.vmem %s1092_s28, 16 }
  0x66   : > { %1278 = vmatpush3.bf16.msra.mxu0 %v1407_v5  ;;  %1311 = vmatprep.subr.bf16.mxu1 %v1610_v0  ;;  %v428_v39 = vpack.c.bf16 %v1863_v37, %v1860_v36  ;;  %v1873_v41 = vld [vmem:[%s1798_s26 + $0x78] sm:$0xff]  ;;  %v615_v45 = vld [vmem:[%s2082_s5] sm:$0x1]  ;;  %p1504_p10 = scmp.ne.s32.totalorder %s1092_s28, %s1503_s10  ;;  %p2106_p1 = scmp.ne.s32.totalorder %s2100_s21, 0 }
  0x67   : > { %1279 = vmatprep.subr.bf16.mxu0 %v1409_v7  ;;  %v429_v42 = vpack.c.bf16 %v1873_v41, %v1870_v40  ;;  %v1886_v46 = vld [vmem:[%s2080_s3] ss:$0 sm:$0xff]  ;;  %s1612_s19 = smov [#allocation10]  }
  0x68   : > { %v1901_v63 = vld [vmem:[%s2083_s6] ss:$0 sm:$0xff]  ;;  %p1505_p2 = pnand %p1504_p10, %p2106_p1  ;;  %s1507_s29 = sshll.u32 %s1612_s19, 4  ;;  %s1508_s29 = int_to_ptr.vmem [resolvable:$false] %s1507_s29 }
  0x69   : > { %1312 = vmatpush3.bf16.msra.mxu1 %v1410_v8  ;;  %s1509_s24 = scalar_lea.vmem %s1508_s29, 32  ;;  %p1510_p12 = scmp.lt.s32.totalorder %s1092_s28, %s1508_s29 }
  0x6a   : > { %1280 = vmatpush3.bf16.msra.mxu0 %v1409_v7  ;;  %1313 = vmatprep.subr.bf16.mxu1 %v1610_v0  ;;  %p1506_p6 = pneg %p1505_p2  ;;  %p1511_p7 = scmp.lt.s32.totalorder %s1509_s24, %s1503_s10 }
  0x6b   : > { %1281 = vmatprep.subr.bf16.mxu0 %v1411_v9 }
  0x6c   : > { %p1512_p9 = por %p1511_p7, %p1510_p12 }
  0x6d   : > { %1314 = vmatpush3.bf16.msra.mxu1 %v1412_v10 }
  0x6e   : > { %1282 = vmatpush3.bf16.msra.mxu0 %v1411_v9  ;;  %1315 = vmatprep.subr.bf16.mxu1 %v1610_v0  ;;  %p1513_p13 = pnand %p1512_p9, %p1506_p6 }
  0x6f   : > { %1283 = vmatprep.subr.bf16.mxu0 %v1413_v11 }
  0x71   : > { %1316 = vmatpush3.bf16.msra.mxu1 %v1414_v15 }
  0x72   : > { %1284 = vmatpush3.bf16.msra.mxu0 %v1413_v11  ;;  %1317 = vmatprep.subr.bf16.mxu1 %v1610_v0 }
  0x73   : > { %1285 = vmatprep.subr.bf16.mxu0 %v1415_v16 }
  0x75   : > { %1318 = vmatpush3.bf16.msra.mxu1 %v1416_v17 }
  0x76   : > { %1286 = vmatpush3.bf16.msra.mxu0 %v1415_v16  ;;  %1319 = vmatprep.subr.bf16.mxu1 %v1610_v0 }
  0x77   : > { %1287 = vmatprep.subr.bf16.mxu0 %v1417_v18 }
  0x79   : > { %1320 = vmatpush3.bf16.msra.mxu1 %v1418_v19 }
  0x7a   : > { %1288 = vmatpush3.bf16.msra.mxu0 %v1417_v18 }
  0x7c   : > { %1322 = vmatmul.mubr.bf16.vlgmr.msra.gmra.mxu1 %v598_v25 }
  0x7d   : > { %1290 = vmatmul.mubr.bf16.vlgmr.msra.gmra.mxu0 %v423_v26 }
  0x7e   : > { %1293 = vmatprep.mubr.bf16.mxu0 %v424_v27 }
  0x85   : > { %1294 = vmatmul.mubr.bf16.gmra.mxu0 %v425_v32 }
  0x86   : > { %1297 = vmatprep.mubr.bf16.mxu0 %v426_v33 }
  0x8d   : > { %1298 = vmatmul.mubr.bf16.gmra.mxu0 %v427_v38 }
  0x8e   : > { %1301 = vmatprep.mubr.bf16.mxu0 %v428_v39 }
  0x95   : > { %1302 = vmatmul.mubr.bf16.gmra.mxu0 %v429_v42 }
 0x13c   : > { %v698_v48 = vpop.f32.mrf.mxu1 }
 0x13d   : > { %v1291_v49 = vpop.f32.mrf.mxu0  ;;  %v699_v50 = vadd.f32 %v698_v48, %v615_v45 }
 0x13e   : > { %v544_v51 = vadd.f32 %v1291_v49, %v1886_v46  ;;  %v1323_v52 = vpop.f32.mrf.mxu1 }
 0x13f   : > { %v535_v53 = vpop.f32.mrf.mxu0  ;;  %v1892_v54 = vrot.slane %v699_v50, %v706_v47 }
 0x140   : > { %v536_v55 = vadd.f32 %v1886_v46, %v535_v53  ;;  %v701_v56 = vpop.f32.mrf.mxu1 }
 0x141   : > { %v1292_v57 = vpop.f32.mrf.mxu0  ;;  %v710_v59 = vadd.f32 %v1892_v54, %v544_v51 }
 0x142   : > { %v547_v58 = vadd.f32 %v1292_v57, %v1886_v46  ;;  %v708_v60 = vadd.f32 %v1892_v54, %v536_v55  ;;  %v1324_v61 = vpop.f32.mrf.mxu1 }
 0x143   : > { %v538_v62 = vpop.f32.mrf.mxu0  ;;  %v726_v2 = vmax.f32 %v710_v59, 0.0 }
 0x144   : > { %v711_v0 = vadd.f32 %v1892_v54, %v547_v58  ;;  %v539_v1 = vadd.f32 %v1886_v46, %v538_v62  ;;  %v724_v3 = vmax.f32 %v708_v60, 0.0 }
 0x145   : > { %v1295_v4 = vpop.f32.mrf.mxu0  ;;  %v749_v8 = vmul.f32 %v1901_v63, %v726_v2 }
 0x146   : > { %v727_v5 = vmax.f32 %v711_v0, 0.0  ;;  %v709_v6 = vadd.f32 %v1892_v54, %v539_v1  ;;  %v560_v7 = vadd.f32 %v1295_v4, %v1886_v46  ;;  %v747_v10 = vmul.f32 %v1901_v63, %v724_v3 }
 0x147   : > { %v551_v9 = vpop.f32.mrf.mxu0  ;;  %767 = vadd.xlane.f32.xlu1 %v749_v8 }
 0x148   : > { %v725_v11 = vmax.f32 %v709_v6, 0.0  ;;  %v714_v14 = vadd.f32 %v1892_v54, %v560_v7  ;;  %v552_v15 = vadd.f32 %v1886_v46, %v551_v9  ;;  %v750_v16 = vmul.f32 %v1901_v63, %v727_v5  ;;  %763 = vadd.xlane.f32.xlu0 %v747_v10 }
 0x149   : > { %v1296_v17 = vpop.f32.mrf.mxu0 }
 0x14a   : > { %v563_v18 = vadd.f32 %v1296_v17, %v1886_v46  ;;  %v748_v19 = vmul.f32 %v1901_v63, %v725_v11  ;;  %v730_v20 = vmax.f32 %v714_v14, 0.0  ;;  %v712_v25 = vadd.f32 %v1892_v54, %v552_v15 }
 0x14b   : > { %v554_v26 = vpop.f32.mrf.mxu0  ;;  %769 = vadd.xlane.f32.xlu1 %v750_v16 }
 0x14c   : > { %v715_v27 = vadd.f32 %v1892_v54, %v563_v18  ;;  %v555_v32 = vadd.f32 %v1886_v46, %v554_v26  ;;  %765 = vadd.xlane.f32.xlu0 %v748_v19  ;;  %v728_v45 = vmax.f32 %v712_v25, 0.0  ;;  %v753_v49 = vmul.f32 %v1901_v63, %v730_v20 }
 0x14d   : > { %v1299_v33 = vpop.f32.mrf.mxu0 }
 0x14e   : > { %v731_v38 = vmax.f32 %v715_v27, 0.0  ;;  %v713_v39 = vadd.f32 %v1892_v54, %v555_v32  ;;  %v576_v42 = vadd.f32 %v1299_v33, %v1886_v46  ;;  %v751_v60 = vmul.f32 %v1901_v63, %v728_v45 }
 0x14f   : > { %v567_v48 = vpop.f32.mrf.mxu0 }
 0x150   : > { %v729_v50 = vmax.f32 %v713_v39, 0.0  ;;  %v718_v51 = vadd.f32 %v1892_v54, %v576_v42  ;;  %v568_v52 = vadd.f32 %v1886_v46, %v567_v48  ;;  %v754_v53 = vmul.f32 %v1901_v63, %v731_v38  ;;  %775 = vadd.xlane.f32.xlu0 %v753_v49 }
 0x151   : > { %v1300_v55 = vpop.f32.mrf.mxu0  ;;  %v1947_v48 = vand.u32 127, %v704_v43 }
 0x152   : > { %v579_v56 = vadd.f32 %v1300_v55, %v1886_v46  ;;  %777 = vadd.xlane.f32.xlu1 %v754_v53  ;;  %v734_v57 = vmax.f32 %v718_v51, 0.0  ;;  %v716_v58 = vadd.f32 %v1892_v54, %v568_v52  ;;  %v752_v0 = vmul.f32 %v1901_v63, %v729_v50 }
 0x153   : > { %v570_v59 = vpop.f32.mrf.mxu0  ;;  %v836_v49 = vadd.s32 4294967288, %v1947_v48  ;;  %v1950_v51 = vstv %s795_s25  ;;  %v843_v52 = vadd.s32 4294967280, %v1947_v48  ;;  %v834_v55 = vsub.s32 %v1947_v48, %v1878_v44 }
 0x154   : > { %v719_v61 = vadd.f32 %v1892_v54, %v579_v56  ;;  %v571_v62 = vadd.f32 %v1886_v46, %v570_v59  ;;  %771 = vadd.xlane.f32.xlu0 %v751_v60  ;;  %v732_v4 = vmax.f32 %v716_v58, 0.0  ;;  %v757_v7 = vmul.f32 %v1901_v63, %v734_v57 }
 0x155   : > { %v1303_v1 = vpop.f32.mrf.mxu0  ;;  %v839_v53 = vsub.s32 %v836_v49, %v1878_v44  ;;  %v846_v58 = vsub.s32 %v843_v52, %v1878_v44  ;;  %v850_v59 = vadd.s32 4294967272, %v1947_v48  ;;  %vm815_vm0 = vcmp.lt.s32.totalorder %v1947_v48, 16 }
 0x156   : > { %v735_v2 = vmax.f32 %v719_v61, 0.0  ;;  %v717_v3 = vadd.f32 %v1892_v54, %v571_v62  ;;  %773 = vadd.xlane.f32.xlu1 %v752_v0  ;;  %v592_v5 = vadd.f32 %v1303_v1, %v1886_v46  ;;  %v755_v18 = vmul.f32 %v1901_v63, %v732_v4 }
 0x157   : > { %v583_v6 = vpop.f32.mrf.mxu0  ;;  %v857_v62 = vadd.s32 4294967264, %v1947_v48  ;;  %v871_v1 = vadd.s32 4294967248, %v1947_v48 }
 0x158   : > { %v733_v8 = vmax.f32 %v717_v3, 0.0  ;;  %v584_v9 = vadd.f32 %v1886_v46, %v583_v6  ;;  %v758_v10 = vmul.f32 %v1901_v63, %v735_v2  ;;  %783 = vadd.xlane.f32.xlu0 %v757_v7  ;;  %v722_v16 = vadd.f32 %v1892_v54, %v592_v5 }
 0x159   : > { %v1304_v11 = vpop.f32.mrf.mxu0  ;;  %v864_v3 = vadd.s32 4294967256, %v1947_v48  ;;  %v853_v5 = vsub.s32 %v850_v59, %v1878_v44 }
 0x15a   : > { %v720_v14 = vadd.f32 %v1892_v54, %v584_v9  ;;  %v595_v15 = vadd.f32 %v1304_v11, %v1886_v46  ;;  %785 = vadd.xlane.f32.xlu1 %v758_v10  ;;  %v756_v25 = vmul.f32 %v1901_v63, %v733_v8  ;;  %v738_v33 = vmax.f32 %v722_v16, 0.0 }
 0x15b   : > { %v586_v17 = vpop.f32.mrf.mxu0  ;;  %v860_v9 = vsub.s32 %v857_v62, %v1878_v44  ;;  %v874_v10 = vsub.s32 %v871_v1, %v1878_v44  ;;  %v878_v16 = vadd.s32 4294967240, %v1947_v48 }
 0x15c   : > { %v736_v19 = vmax.f32 %v720_v14, 0.0  ;;  %v587_v20 = vadd.f32 %v1886_v46, %v586_v17  ;;  %779 = vadd.xlane.f32.xlu0 %v755_v18  ;;  %v723_v26 = vadd.f32 %v1892_v54, %v595_v15  ;;  %v761_v45 = vmul.f32 %v1901_v63, %v738_v33 }
 0x15d   : > { %v867_v14 = vsub.s32 %v864_v3, %v1878_v44  ;;  %v881_v49 = vsub.s32 %v878_v16, %v1878_v44  ;;  %v920_v3 = vadd.s32 4294967192, %v1947_v48 }
 0x15e   : > { %v721_v27 = vadd.f32 %v1892_v54, %v587_v20  ;;  %781 = vadd.xlane.f32.xlu1 %v756_v25  ;;  %v759_v32 = vmul.f32 %v1901_v63, %v736_v19  ;;  %v739_v39 = vmax.f32 %v723_v26, 0.0  ;;  %v899_v25 = vadd.s32 4294967216, %v1947_v48 }
 0x160   : > { %v737_v38 = vmax.f32 %v721_v27, 0.0  ;;  %787 = vadd.xlane.f32.xlu0 %v759_v32  ;;  %v762_v46 = vmul.f32 %v1901_v63, %v739_v39  ;;  %v885_v32 = vadd.s32 4294967232, %v1947_v48 }
 0x162   : > { %v760_v42 = vmul.f32 %v1901_v63, %v737_v38 }
 0x164   : > { %789 = vadd.xlane.f32.xlu1 %v760_v42  ;;  %791 = vadd.xlane.f32.xlu0 %v761_v45  ;;  %v906_v42 = vadd.s32 4294967208, %v1947_v48  ;;  %v892_v45 = vadd.s32 4294967224, %v1947_v48 }
 0x168   : > { %793 = vadd.xlane.f32.xlu1 %v762_v46 }
 0x1d0   : > { %v768_v54 = vpop.xlane.xlu1 %767 }
 0x1d1   : > { %v764_v50 = vpop.xlane.xlu0 %763  ;;  %v799_v60 = vadd.f32 %v1950_v51, %v768_v54 }
 0x1d2   : > { %v797_v63 = vadd.f32 %v1950_v51, %v764_v50 }
 0x1d3   : > { %v847_v8 = vrot.slane %v799_v60, %v846_v58  ;;  %v895_v58 = vsub.s32 %v892_v45, %v1878_v44 }
 0x1d4   : > { %v770_v57 = vpop.xlane.xlu1 %769  ;;  %v835_v0 = vrot.slane %v797_v63, %v834_v55  ;;  %v888_v55 = vsub.s32 %v885_v32, %v1878_v44  ;;  %v913_v63 = vadd.s32 4294967200, %v1947_v48 }
 0x1d5   : > { %v766_v56 = vpop.xlane.xlu0 %765  ;;  %v800_v6 = vadd.f32 %v1950_v51, %v770_v57  ;;  %v909_v57 = vsub.s32 %v906_v42, %v1878_v44 }
 0x1d6   : > { %v798_v43 = vadd.f32 %v1950_v51, %v766_v56  ;;  %v902_v56 = vsub.s32 %v899_v25, %v1878_v44 }
 0x1d7   : > { %v854_v19 = vrot.slane %v800_v6, %v853_v5  ;;  %v916_v5 = vsub.s32 %v913_v63, %v1878_v44  ;;  %v927_v6 = vadd.s32 4294967184, %v1947_v48 }
 0x1d8   : > { %v840_v61 = vrot.slane %v798_v43, %v839_v53 }
 0x1d9   : > { %v776_v2 = vpop.xlane.xlu0 %775 }
 0x1da   : > { %v842_v7 = vsel %vm841_vm1, %v840_v61, %v835_v0  ;;  %v803_v26 = vadd.f32 %v1950_v51, %v776_v2  ;;  %vm943_vm1 = vcmask 1040384  }
 0x1db   : > { %v778_v4 = vpop.xlane.xlu1 %777  ;;  %v849_v15 = vsel %vm848_vm2, %v847_v8, %v842_v7 }
 0x1dc   : > { %v856_v33 = vsel %vm855_vm3, %v854_v19, %v849_v15  ;;  %v804_v50 = vadd.f32 %v1950_v51, %v778_v4  ;;  %v875_v53 = vrot.slane %v803_v26, %v874_v10  ;;  %v930_v26 = vsub.s32 %v927_v6, %v1878_v44 }
 0x1dd   : > { %v772_v11 = vpop.xlane.xlu0 %771 }
 0x1de   : > { %v801_v17 = vadd.f32 %v1950_v51, %v772_v11  ;;  %v882_v0 = vrot.slane %v804_v50, %v881_v49 }
 0x1df   : > { %v774_v18 = vpop.xlane.xlu1 %773 }
 0x1e0   : > { %v802_v20 = vadd.f32 %v1950_v51, %v774_v18  ;;  %v861_v27 = vrot.slane %v801_v17, %v860_v9  ;;  %v923_v17 = vsub.s32 %v920_v3, %v1878_v44  ;;  %v934_v18 = vadd.s32 4294967176, %v1947_v48 }
 0x1e1   : > { %v784_v39 = vpop.xlane.xlu0 %783 }
 0x1e2   : > { %v868_v38 = vrot.slane %v802_v20, %v867_v14  ;;  %v863_v46 = vsel %vm862_vm4, %v861_v27, %v856_v33  ;;  %v807_v60 = vadd.f32 %v1950_v51, %v784_v39  ;;  %v937_v42 = vsub.s32 %v934_v18, %v1878_v44 }
 0x1e3   : > { %v786_v54 = vpop.xlane.xlu1 %785 }
 0x1e4   : > { %v870_v52 = vsel %vm869_vm5, %v868_v38, %v863_v46  ;;  %v808_v1 = vadd.f32 %v1950_v51, %v786_v54  ;;  %v903_v10 = vrot.slane %v807_v60, %v902_v56 }
 0x1e5   : > { %v780_v43 = vpop.xlane.xlu0 %779  ;;  %v877_v59 = vsel %vm876_vm6, %v875_v53, %v870_v52 }
 0x1e6   : > { %v805_v61 = vadd.f32 %v1950_v51, %v780_v43  ;;  %v884_v7 = vsel %vm883_vm7, %v882_v0, %v877_v59  ;;  %v910_v15 = vrot.slane %v808_v1, %v909_v57 }
 0x1e7   : > { %v782_v62 = vpop.xlane.xlu1 %781 }
 0x1e8   : > { %v806_v2 = vadd.f32 %v1950_v51, %v782_v62  ;;  %v889_v4 = vrot.slane %v805_v61, %v888_v55 }
 0x1e9   : > { %v788_v9 = vpop.xlane.xlu0 %787 }
 0x1ea   : > { %v896_v8 = vrot.slane %v806_v2, %v895_v58  ;;  %v891_v11 = vsel %vm890_vm8, %v889_v4, %v884_v7  ;;  %v809_v14 = vadd.f32 %v1950_v51, %v788_v9 }
 0x1ec   : > { %v898_v16 = vsel %vm897_vm9, %v896_v8, %v891_v11  ;;  %v917_v20 = vrot.slane %v809_v14, %v916_v5 }
 0x1ed   : > { %v905_v19 = vsel %vm904_vm10, %v903_v10, %v898_v16  ;;  %v790_v25 = vpop.xlane.xlu1 %789  ;;  %v792_v33 = vpop.xlane.xlu0 %791 }
 0x1ee   : > { %v912_v27 = vsel %vm911_vm11, %v910_v15, %v905_v19  ;;  %v810_v32 = vadd.f32 %v1950_v51, %v790_v25  ;;  %v811_v38 = vadd.f32 %v1950_v51, %v792_v33 }
 0x1ef   : > { %v919_v45 = vsel %vm918_vm12, %v917_v20, %v912_v27 }
 0x1f0   : > { %v924_v39 = vrot.slane %v810_v32, %v923_v17  ;;  %v931_v46 = vrot.slane %v811_v38, %v930_v26 }
 0x1f1   : > { %v794_v54 = vpop.xlane.xlu1 %793 }
 0x1f2   : > { %v812_v49 = vadd.f32 %v1950_v51, %v794_v54  ;;  %v926_v50 = vsel %vm925_vm13, %v924_v39, %v919_v45 }
 0x1f3   : > { %v933_v53 = vsel %vm932_vm14, %v931_v46, %v926_v50 }
 0x1f4   : > { %v938_v52 = vrot.slane %v812_v49, %v937_v42 }
 0x1f6   : > { %v940_v55 = vsel %vm939_vm15, %v938_v52, %v933_v53 }
 0x1f7   : > { %v942_v63 = vsel %vm815_vm0, %v940_v55, -1e+30 }
 0x1f8   : > { %v944_v56 = vsel %vm943_vm1, %v942_v63, -inf }
 0x1f9   : > { %945 = vmax.xlane.f32.xlu0 %v944_v56 }
 0x282   : > { %v946_v57 = vpop.xlane.xlu0 %945 }
 0x283   : > { %v947_v43 = vsub.f32 %v942_v63, %v946_v57 }
 0x285   : > { %v948_v58 = vmul.f32 1.442695, %v947_v43 }
 0x287   : > { %1419 = vpow2.f32 %v948_v58 }
 0x294   : > { %v1420_v59 = vpop.eup %1419 }
 0x295   : > { %v950_v60 = vsel %vm943_vm1, %v1420_v59, 0.0 }
 0x296   : > { %951 = vadd.xlane.f32.xlu1 %v950_v60 }
 0x31f   : > { %v952_v51 = vpop.xlane.xlu1 %951 }
 0x320   : > { %1421 = vrcp.f32 %v952_v51 }
 0x32d   : > { %v1422_v61 = vpop.eup %1421 }
 0x32e   : > { %v954_v62 = vmul.f32 %v1422_v61, %v1420_v59 }
 0x330   : > { %v959_v48 = vrot.slane %v954_v62, %v706_v47  ;;  %955 = vst [vmem:[%s400_s4] sm:$0x1] %v954_v62 }
 0x332   : > { %965 = vbcast.lane.b32.xlu1 %v959_v48, 264  ;;  %961 = vbcast.lane.b32.xlu0 %v959_v48, 256 }
 0x336   : > { %969 = vbcast.lane.b32.xlu1 %v959_v48, 272  ;;  %977 = vbcast.lane.b32.xlu0 %v959_v48, 288 }
 0x33a   : > { %973 = vbcast.lane.b32.xlu1 %v959_v48, 280  ;;  %985 = vbcast.lane.b32.xlu0 %v959_v48, 304 }
 0x33e   : > { %981 = vbcast.lane.b32.xlu1 %v959_v48, 296  ;;  %993 = vbcast.lane.b32.xlu0 %v959_v48, 320 }
 0x342   : > { %989 = vbcast.lane.b32.xlu1 %v959_v48, 312  ;;  %1001 = vbcast.lane.b32.xlu0 %v959_v48, 336 }
 0x346   : > { %997 = vbcast.lane.b32.xlu1 %v959_v48, 328  ;;  %1009 = vbcast.lane.b32.xlu0 %v959_v48, 352 }
 0x34a   : > { %1005 = vbcast.lane.b32.xlu1 %v959_v48, 344  ;;  %1017 = vbcast.lane.b32.xlu0 %v959_v48, 368 }
 0x34e   : > { %1013 = vbcast.lane.b32.xlu1 %v959_v48, 360 }
 0x352   : > { %1021 = vbcast.lane.b32.xlu1 %v959_v48, 376 }
 0x353   : > { %1516 = shalt.err (!%p1513_p13)
}
 0x354   : > { %s1517_s23 = scalar_lea.hbm %s1089_s18, 16  ;;  %s1521_s4 = scalar_lea.hbm %s2086_s9, 32 }
 0x355   : > { %p1518_p5 = scmp.ne.s32.totalorder %s1089_s18, %s1517_s23  ;;  %p1522_p8 = scmp.lt.s32.totalorder %s1089_s18, %s2086_s9 }
 0x356   : > { %p1523_p3 = scmp.lt.s32.totalorder %s1521_s4, %s1517_s23 }
 0x357   : > { %p1519_p0 = pnand %p1518_p5, %p2106_p1 }
 0x358   : > { %p1524_p11 = por %p1523_p3, %p1522_p8 }
 0x359   : > { %p1520_p4 = pneg %p1519_p0 }
 0x35b   : > { %p1525_p10 = pnand %p1524_p11, %p1520_p4 }
 0x35d   : > { %1528 = shalt.err (!%p1525_p10)
}
 0x35e   : > { %1336 = dma.vmem_to_hbm [thread:$0]  (%p2106_p1), %s1092_s28, 16, %s1089_s18, %s1066_s30  }
 0x35f   : > { %s394_s18 = scalar_lea.vmem [#allocation9], %s1794_s2  ;;  %s1076_s19 = scalar_lea.hbm %s2085_s8, %s1243_s27 }
 0x360   : > { %s1078_s28 = sshll.u32 %s394_s18, 4  ;;  %s1062_s29 = scalar_lea.sflag [#allocation5], %s1794_s2  ;;  %s1079_s28 = int_to_ptr.vmem [resolvable:$true] %s1078_s28 }
 0x361   : > { %s1529_s24 = scalar_lea.vmem %s1079_s28, 16  ;;  %s1613_s23 = smov [#allocation9]  }
 0x362   : > { %p1530_p2 = scmp.ne.s32.totalorder %s1079_s28, %s1529_s24  ;;  %s1533_s20 = sshll.u32 %s1613_s23, 4  ;;  %s1534_s20 = int_to_ptr.vmem [resolvable:$false] %s1533_s20 }
 0x363   : > { %s1535_s25 = scalar_lea.vmem %s1534_s20, 32  ;;  %p1536_p7 = scmp.lt.s32.totalorder %s1079_s28, %s1534_s20 }
 0x364   : > { %p1531_p6 = pnand %p1530_p2, %p2106_p1  ;;  %p1537_p9 = scmp.lt.s32.totalorder %s1535_s25, %s1529_s24 }
 0x366   : > { %p1532_p12 = pneg %p1531_p6  ;;  %p1538_p13 = por %p1537_p9, %p1536_p7 }
 0x368   : > { %p1539_p5 = pnand %p1538_p13, %p1532_p12 }
 0x3a4   : > { %v966_v44 = vpop.permute.xlu1 %965  ;;  %v962_v47 = vpop.permute.xlu0 %961 }
 0x3a5   : > { %v1024_v0 = vmul.f32 %v966_v44, %v1812_v13  ;;  %v1023_v1 = vmul.f32 %v962_v47, %v1809_v12 }
 0x3a7   : > { %v1039_v5 = vadd.f32 %v1024_v0, %v1023_v1 }
 0x3a8   : > { %v970_v2 = vpop.permute.xlu1 %969  ;;  %v978_v3 = vpop.permute.xlu0 %977 }
 0x3a9   : > { %v1025_v4 = vmul.f32 %v970_v2, %v1822_v21  ;;  %v1027_v10 = vmul.f32 %v978_v3, %v1828_v23 }
 0x3ab   : > { %v1040_v8 = vadd.f32 %v1039_v5, %v1025_v4 }
 0x3ac   : > { %v974_v6 = vpop.permute.xlu1 %973  ;;  %v986_v7 = vpop.permute.xlu0 %985 }
 0x3ad   : > { %v1026_v9 = vmul.f32 %v974_v6, %v1825_v22  ;;  %v1029_v12 = vmul.f32 %v986_v7, %v1838_v28 }
 0x3af   : > { %v1041_v11 = vadd.f32 %v1040_v8, %v1026_v9 }
 0x3b0   : > { %v982_v14 = vpop.permute.xlu1 %981  ;;  %v994_v15 = vpop.permute.xlu0 %993 }
 0x3b1   : > { %v1028_v16 = vmul.f32 %v982_v14, %v1831_v24  ;;  %v1042_v13 = vadd.f32 %v1041_v11, %v1027_v10  ;;  %v1031_v25 = vmul.f32 %v994_v15, %v1844_v30 }
 0x3b3   : > { %v1043_v17 = vadd.f32 %v1042_v13, %v1028_v16 }
 0x3b4   : > { %v990_v18 = vpop.permute.xlu1 %989  ;;  %v1002_v19 = vpop.permute.xlu0 %1001 }
 0x3b5   : > { %v1030_v21 = vmul.f32 %v990_v18, %v1841_v29  ;;  %v1044_v20 = vadd.f32 %v1043_v17, %v1029_v12  ;;  %v1033_v33 = vmul.f32 %v1002_v19, %v1854_v34 }
 0x3b7   : > { %v1045_v26 = vadd.f32 %v1044_v20, %v1030_v21 }
 0x3b8   : > { %v998_v22 = vpop.permute.xlu1 %997  ;;  %v1010_v32 = vpop.permute.xlu0 %1009 }
 0x3b9   : > { %v1032_v23 = vmul.f32 %v998_v22, %v1847_v31  ;;  %v1046_v27 = vadd.f32 %v1045_v26, %v1031_v25  ;;  %v1035_v42 = vmul.f32 %v1010_v32, %v1860_v36 }
 0x3bb   : > { %v1047_v24 = vadd.f32 %v1046_v27, %v1032_v23 }
 0x3bc   : > { %v1006_v38 = vpop.permute.xlu1 %1005  ;;  %v1018_v45 = vpop.permute.xlu0 %1017 }
 0x3bd   : > { %v1034_v28 = vmul.f32 %v1006_v38, %v1857_v35  ;;  %v1048_v39 = vadd.f32 %v1047_v24, %v1033_v33  ;;  %v1037_v31 = vmul.f32 %v1018_v45, %v1870_v40 }
 0x3bf   : > { %v1049_v29 = vadd.f32 %v1048_v39, %v1034_v28 }
 0x3c0   : > { %v1014_v46 = vpop.permute.xlu1 %1013 }
 0x3c1   : > { %v1036_v30 = vmul.f32 %v1014_v46, %v1863_v37  ;;  %v1050_v54 = vadd.f32 %v1049_v29, %v1035_v42 }
 0x3c3   : > { %v1051_v49 = vadd.f32 %v1050_v54, %v1036_v30 }
 0x3c4   : > { %v1022_v34 = vpop.permute.xlu1 %1021 }
 0x3c5   : > { %v1038_v50 = vmul.f32 %v1022_v34, %v1873_v41  ;;  %v1052_v52 = vadd.f32 %v1051_v49, %v1037_v31 }
 0x3c7   : > { %v1053_v35 = vadd.f32 %v1052_v52, %v1038_v50 }
 0x3c9   : > { %v1054_v53 = vrot.slane %v1053_v35, 4 }
 0x3cb   : > { %v1055_v36 = vadd.f32 %v1054_v53, %v1053_v35 }
 0x3cd   : > { %v1056_v55 = vrot.slane %v1055_v36, 2 }
 0x3cf   : > { %v1057_v63 = vadd.f32 %v1056_v55, %v1055_v36 }
 0x3d1   : > { %v1058_v56 = vrot.slane %v1057_v63, 1 }
 0x3d3   : > { %v1059_v37 = vadd.f32 %v1058_v56, %v1057_v63 }
 0x3d5   : > { %1060 = vst [vmem:[%s394_s18] sm:$0x1] %v1059_v37 }
 0x3d6   : > { %1542 = shalt.err (!%p1539_p5)
}
 0x3d7   : > { %s1543_s7 = scalar_lea.hbm %s1076_s19, 16  ;;  %s1547_s4 = scalar_lea.hbm %s2085_s8, 32 }
 0x3d8   : > { %p1544_p0 = scmp.ne.s32.totalorder %s1076_s19, %s1543_s7  ;;  %p1548_p3 = scmp.lt.s32.totalorder %s1076_s19, %s2085_s8 }
 0x3d9   : > { %p1549_p11 = scmp.lt.s32.totalorder %s1547_s4, %s1543_s7 }
 0x3da   : > { %p1545_p4 = pnand %p1544_p0, %p2106_p1 }
 0x3db   : > { %p1550_p10 = por %p1549_p11, %p1548_p3 }
 0x3dc   : > { %p1546_p8 = pneg %p1545_p4 }
 0x3de   : > { %p1551_p2 = pnand %p1550_p10, %p1546_p8 }
 0x3e0   : > { %1554 = shalt.err (!%p1551_p2)
}
 0x3e1   : > { %1335 = dma.vmem_to_hbm [thread:$0]  (%p2106_p1), %s1079_s28, 16, %s1076_s19, %s1062_s29  }
 0x3e2 PF: > { %s1103_s18 = sand.u32 1, %s1589_s11   ;;  %p2107_p6 = scmp.ne.s32.totalorder %s2094_s17, 0 }
 0x3e3   : > { %p2108_p12 = scmp.ge.s32.totalorder %s1601_s14, 2  ;;  %s1104_s30 = scalar_lea.sflag [#allocation5], %s1103_s18 }
 0x3e5   : > { %p1351_p7 = pnand %p2108_p12, %p2107_p6 }
 0x3e7   : > { %p1352_p9 = pneg %p1351_p7 }
 0x3e9   : > { %1580 = dma.done.wait (%p1352_p9), %s1104_s30, 16  }
 0x3ea   : > { %1582 = vsyncadd (%p1352_p9), %s1104_s30, 4294967280  ;;  %s1112_s10 = scalar_lea.sflag [#allocation11], %s1103_s18 }
 0x3eb   : > { %1584 = dma.done.wait (%p1352_p9), %s1112_s10, 16  }
 0x3ec   : > { %1586 = vsyncadd (%p1352_p9), %s1112_s10, 4294967280  ;;  %p28_p1 = scmp.ge.s32.totalorder %s1739_s15, 4   ;;  %s2109_s11 = smov %s1593_s12 }
 0x3ed   : > { %s2110_s12 = smov %s1597_s13  ;;  %s2111_s13 = smov %s1755_s22 }
 0x3ee   : > { %s2112_s14 = smov %s1739_s15  ;;  %30 = sbr.rel (!%p28_p1) target bundleno = 12 (0xc), region = 125 }
 0x3f3   :  { %1116 = vsyncpa [#allocation4], 1 }
 0x3f4   :  { %1118 = vsyncpa [#allocation4 + $0x1], 1 }
 0x3f5   :  { %1119 = vsyncpa [#allocation7], 1 }
 0x3f6   :  { %1120 = vsyncpa [#allocation5], 1 }
 0x3f7   :  { %1122 = vsyncpa [#allocation5 + $0x1], 1 }
 0x3f8   :  { %1123 = vsyncpa [#allocation11], 1 }
 0x3f9   :  { %1125 = vsyncpa [#allocation11 + $0x1], 1 }

</bundles_post_ra>
